<compile_context>
chip_gen: v7x
topology: tpu7x:2x2x1
jax: 0.10.0
libtpu: 0.0.40
codegen_flags: <defaults>
</compile_context>

<pallas_src>
import jax
import jax.numpy as jnp
import numpy as np
from jax.experimental import pallas as pl
from jax.experimental.pallas import tpu as pltpu

_HI = jax.lax.Precision.HIGHEST


def _cdiv(a, b):
    return -(-a // b)


def _round_up(a, b):
    return _cdiv(a, b) * b


# --------------------------------------------------------------------------
# Kernel 1: one-time per-node table  tab[t] = [U(h_t) | U_neg(h_t)]
# --------------------------------------------------------------------------
def ipds_table_kernel(dv_ref, w0_ref, w1_ref, b1_ref, wh_ref, bh_ref, tab_ref):
    # dv_ref: (TN, Din)   w0: (Din, H)   w1: (H, H)   b1: (1, H)
    # wh = [wu | wun]: (H, P)   bh = [bu | bun]: (1, P)   tab_ref: (TN, P)
    x = dv_ref[...]
    h = jnp.tanh(jnp.dot(x, w0_ref[...],
                         preferred_element_type=jnp.float32, precision=_HI))
    h = jnp.tanh(jnp.dot(h, w1_ref[...],
                         preferred_element_type=jnp.float32, precision=_HI)
                 + b1_ref[...])
    tab_ref[...] = (jnp.dot(h, wh_ref[...],
                            preferred_element_type=jnp.float32, precision=_HI)
                    + bh_ref[...])


def ipds_node_table(data_vectors, w0, w1, b1, wu, bu, wun, bun, *, node_tile=256):
    """Builds the fused per-node head table (total_nodes, pu+pn)."""
    T, din = data_vectors.shape
    hid = w0.shape[1]
    wh = jnp.concatenate([wu, wun], axis=1)        # (hid, P) fused heads
    bh = jnp.concatenate([bu, bun], axis=1)        # (1, P)
    P = wh.shape[1]

    TN = min(node_tile, _round_up(T, 8))           # sublane-aligned node tile
    T_pad = _round_up(T, TN)
    dv = jnp.pad(data_vectors.astype(jnp.float32), ((0, T_pad - T), (0, 0)))

    const = lambda i: (0, 0)                       # weights stay VMEM-resident
    tab = pl.pallas_call(
        ipds_table_kernel,
        out_shape=jax.ShapeDtypeStruct((T_pad, P), jnp.float32),
        grid=(T_pad // TN,),
        in_specs=[
            pl.BlockSpec((TN, din), lambda i: (i, 0)),   # data_vectors tile
            pl.BlockSpec((din, hid), const),             # fc0 weight
            pl.BlockSpec((hid, hid), const),             # fc1 weight
            pl.BlockSpec((1, hid), const),               # fc1 bias
            pl.BlockSpec((hid, P), const),               # fused U|U_neg weight
            pl.BlockSpec((1, P), const),                 # fused U|U_neg bias
        ],
        out_specs=pl.BlockSpec((TN, P), lambda i: (i, 0)),
        compiler_params=pltpu.CompilerParams(
            dimension_semantics=("parallel",)),
    )(dv, w0, w1, b1, wh, bh)
    return tab[:T]


# --------------------------------------------------------------------------
# Kernel 2: per-batch lane-dense similarity (no matmuls, no one-hot)
# --------------------------------------------------------------------------
def ipds_sim_kernel(obj_ref, src_ref, out_ref):
    # obj_ref / src_ref: (1, P, TM)  -- gathered object rows and the
    # (U_neg-negated) source rows with the TB*N "row" axis in lanes.
    # out_ref: (1, 1, TM) lane-dense output block.
    prod = obj_ref[...] * src_ref[...]
    out_ref[...] = jnp.sum(prod, axis=1, keepdims=True)


def ipds_forward(inputs, data_vectors, w0, w1, b1, wu, bu, wun, bun,
                 *, rows_per_tile=1024, node_tile=256):
    """inputs: (B, N) int node ids; returns (B, N-1) IPDS similarities."""
    B, N = inputs.shape
    pu, pn = wu.shape[1], wun.shape[1]
    P = pu + pn

    # One-time table (frozen data_vectors => MLP hoisted off the batch path).
    tab = ipds_node_table(data_vectors, w0, w1, b1, wu, bu, wun, bun,
                          node_tile=node_tile)

    # Batch tiling: >= 2 grid tiles (megacore / both v7x TCs) and up to
    # ~rows_per_tile rows (TB*N) per tile; pad the batch, never fall back to a
    # single tile on non-divisible B.
    n_tiles = min(max(2, _cdiv(B * N, rows_per_tile)), B)
    TB = _cdiv(B, n_tiles)
    n_tiles = _cdiv(B, TB)
    B_pad = TB * n_tiles
    TM = TB * N

    idx = jnp.pad(inputs.astype(jnp.int32), ((0, B_pad - B), (0, 0)))

    # Row lookup on the tiny (total_nodes, P) table.  NOTE: out-of-range ids
    # are clipped/filled here whereas torch indexing would raise.
    sign = jnp.concatenate([jnp.ones((pu,), jnp.float32),
                            -jnp.ones((pn,), jnp.float32)])
    obj = jnp.take(tab, idx.reshape(-1), axis=0)                    # (B_pad*N, P)
    src = jnp.take(tab, idx[:, 0], axis=0) * sign                   # (B_pad, P)
    src = jnp.broadcast_to(src[:, None, :], (B_pad, N, P)).reshape(B_pad * N, P)

    # Lane-dense layout: long row axis (TB*N) -> lanes, features (P) -> sublanes.
    # These wrapper-side transposes are layout plumbing on tiny data.
    objT = obj.T.reshape(P, n_tiles, TM).transpose(1, 0, 2)          # (tiles, P, TM)
    srcT = src.T.reshape(P, n_tiles, TM).transpose(1, 0, 2)

    sim = pl.pallas_call(
        ipds_sim_kernel,
        out_shape=jax.ShapeDtypeStruct((n_tiles, 1, TM), jnp.float32),
        grid=(n_tiles,),
        in_specs=[pl.BlockSpec((1, P, TM), lambda i: (i, 0, 0)),
                  pl.BlockSpec((1, P, TM), lambda i: (i, 0, 0))],
        out_specs=pl.BlockSpec((1, 1, TM), lambda i: (i, 0, 0)),
        compiler_params=pltpu.CompilerParams(
            dimension_semantics=("parallel",)),
    )(objT, srcT)

    # torch: e.narrow(1, 1, N-1) vs e.narrow(1, 0, 1) -> drop the self column
    # (and any batch padding).
    return sim.reshape(B_pad, N)[:B, 1:]


def ipds_embed(data_vectors, w0, w1, b1, wu, bu, wun, bun):
    """Mirrors IPDS.embed(): per-node U and U_neg tables from the same kernel."""
    pu = wu.shape[1]
    tab = ipds_node_table(data_vectors, w0, w1, b1, wu, bu, wun, bun)
    return tab[:, :pu], tab[:, pu:]


# --------------------------------------------------------------------------
# Pure-JAX reference mirroring IPDS.forward (validation only).
# --------------------------------------------------------------------------
def ipds_reference(inputs, data_vectors, w0, w1, b1, wu, bu, wun, bun):
    x = data_vectors[inputs].astype(jnp.float32)
    h = jnp.tanh(jnp.matmul(x, w0, precision=_HI))
    h = jnp.tanh(jnp.matmul(h, w1, precision=_HI) + b1)
    u = jnp.matmul(h, wu, precision=_HI) + bu
    un = jnp.matmul(h, wun, precision=_HI) + bun
    return (jnp.sum(u[:, 1:, :] * u[:, 0:1, :], axis=-1)
            - jnp.sum(un[:, 1:, :] * un[:, 0:1, :], axis=-1))


if __name__ == "__main__":
    # Small shapes consistent with the module:
    #   total_node_num=32, data_vectors dim=16, hidden_size=32,
    #   parameter_num=16, neg_dim=4 -> U outputs 12, U_neg outputs 4,
    #   batch=16, nodes-per-example N=8 (1 source + 7 objects).
    TOTAL_NODES, DIN, HID = 32, 16, 32
    PARAM, NEG_DIM = 16, 4
    PU, PN = PARAM - NEG_DIM, NEG_DIM
    B, N = 16, 8

    key = jax.random.PRNGKey(0)
    k_dv, k_idx, k_w0, k_w1, k_wu, k_wun = jax.random.split(key, 6)

    # frozen data vectors (stand-in for opt['data_vectors'])
    data_vectors = jax.random.normal(k_dv, (TOTAL_NODES, DIN), jnp.float32) * 0.5
    inputs = jax.random.randint(k_idx, (B, N), 0, TOTAL_NODES, dtype=jnp.int32)

    # kaiming-uniform-ish fan_in init, zero biases (matches initialization()
    # spirit -- synthetic weights, no checkpoint).  Stored (in, out) so every
    # matmul is x @ W (== torch's x @ W.T with (out, in) storage).
    w0 = jax.random.uniform(k_w0, (DIN, HID), jnp.float32, -1.0, 1.0) * np.sqrt(6.0 / DIN)
    w1 = jax.random.uniform(k_w1, (HID, HID), jnp.float32, -1.0, 1.0) * np.sqrt(6.0 / HID)
    b1 = jnp.zeros((1, HID), jnp.float32)
    wu = jax.random.uniform(k_wu, (HID, PU), jnp.float32, -1.0, 1.0) * np.sqrt(6.0 / HID)
    bu = jnp.zeros((1, PU), jnp.float32)
    wun = jax.random.uniform(k_wun, (HID, PN), jnp.float32, -1.0, 1.0) * np.sqrt(6.0 / HID)
    bun = jnp.zeros((1, PN), jnp.float32)

    out = ipds_forward(inputs, data_vectors, w0, w1, b1, wu, bu, wun, bun)
    out = jax.block_until_ready(out)

    ref = ipds_reference(inputs, data_vectors, w0, w1, b1, wu, bu, wun, bun)
    np.testing.assert_allclose(np.asarray(out), np.asarray(ref),
                               rtol=1e-3, atol=1e-3)

    print("KERNEL_OK")
</pallas_src>

<mosaic_0001>
module attributes {stable_mosaic.version = 11 : i64} {
  func.func @ipds_table_kernel(%arg0: i32, %arg1: memref<32x16xf32, #tpu.memory_space<vmem>>, %arg2: memref<16x32xf32, #tpu.memory_space<vmem>>, %arg3: memref<32x32xf32, #tpu.memory_space<vmem>>, %arg4: memref<1x32xf32, #tpu.memory_space<vmem>>, %arg5: memref<32x16xf32, #tpu.memory_space<vmem>>, %arg6: memref<1x16xf32, #tpu.memory_space<vmem>>, %arg7: memref<32x16xf32, #tpu.memory_space<vmem>>) attributes {dimension_semantics = [#tpu.dimension_semantics<parallel>], iteration_bounds = array<i64: 1>, scalar_prefetch = 0 : i64, scratch_operands = 0 : i64, tpu.core_type = #tpu.core_type<tc>, window_params = [{transform_indices = @transform_0, window_bounds = array<i64: 32, 16>}, {pipeline_mode = #tpu.pipeline_mode<synchronous>, transform_indices = @transform_1, window_bounds = array<i64: 16, 32>}, {pipeline_mode = #tpu.pipeline_mode<synchronous>, transform_indices = @transform_2, window_bounds = array<i64: 32, 32>}, {pipeline_mode = #tpu.pipeline_mode<synchronous>, transform_indices = @transform_3, window_bounds = array<i64: 1, 32>}, {pipeline_mode = #tpu.pipeline_mode<synchronous>, transform_indices = @transform_4, window_bounds = array<i64: 32, 16>}, {pipeline_mode = #tpu.pipeline_mode<synchronous>, transform_indices = @transform_5, window_bounds = array<i64: 1, 16>}, {transform_indices = @transform_6, window_bounds = array<i64: 32, 16>}]} {
    %c0 = arith.constant 0 : index
    %c0_0 = arith.constant 0 : index
    %0 = vector.load %arg1[%c0, %c0_0] : memref<32x16xf32, #tpu.memory_space<vmem>>, vector<32x16xf32>
    %c0_1 = arith.constant 0 : index
    %c0_2 = arith.constant 0 : index
    %1 = vector.load %arg2[%c0_1, %c0_2] : memref<16x32xf32, #tpu.memory_space<vmem>>, vector<16x32xf32>
    %cst = arith.constant dense<0.000000e+00> : vector<32x32xf32>
    %2 = tpu.matmul %0, %1, %cst {dimension_numbers = #tpu.dot_dimension_numbers<[1], [0], [0], [1], [0, 0, 1, 1], [], []>, precision = #tpu.contract_precision<fp32>} : vector<32x16xf32>, vector<16x32xf32>, vector<32x32xf32> -> vector<32x32xf32>
    %3 = math.tanh %2 : vector<32x32xf32>
    %c0_3 = arith.constant 0 : index
    %c0_4 = arith.constant 0 : index
    %4 = vector.load %arg3[%c0_3, %c0_4] : memref<32x32xf32, #tpu.memory_space<vmem>>, vector<32x32xf32>
    %cst_5 = arith.constant dense<0.000000e+00> : vector<32x32xf32>
    %5 = tpu.matmul %3, %4, %cst_5 {dimension_numbers = #tpu.dot_dimension_numbers<[1], [0], [0], [1], [0, 0, 1, 1], [], []>, precision = #tpu.contract_precision<fp32>} : vector<32x32xf32>, vector<32x32xf32>, vector<32x32xf32> -> vector<32x32xf32>
    %c0_6 = arith.constant 0 : index
    %c0_7 = arith.constant 0 : index
    %6 = vector.load %arg4[%c0_6, %c0_7] : memref<1x32xf32, #tpu.memory_space<vmem>>, vector<1x32xf32>
    %7 = vector.broadcast %6 : vector<1x32xf32> to vector<32x32xf32>
    %8 = arith.addf %5, %7 : vector<32x32xf32>
    %9 = math.tanh %8 : vector<32x32xf32>
    %c0_8 = arith.constant 0 : index
    %c0_9 = arith.constant 0 : index
    %10 = vector.load %arg5[%c0_8, %c0_9] : memref<32x16xf32, #tpu.memory_space<vmem>>, vector<32x16xf32>
    %cst_10 = arith.constant dense<0.000000e+00> : vector<32x16xf32>
    %11 = tpu.matmul %9, %10, %cst_10 {dimension_numbers = #tpu.dot_dimension_numbers<[1], [0], [0], [1], [0, 0, 1, 1], [], []>, precision = #tpu.contract_precision<fp32>} : vector<32x32xf32>, vector<32x16xf32>, vector<32x16xf32> -> vector<32x16xf32>
    %c0_11 = arith.constant 0 : index
    %c0_12 = arith.constant 0 : index
    %12 = vector.load %arg6[%c0_11, %c0_12] : memref<1x16xf32, #tpu.memory_space<vmem>>, vector<1x16xf32>
    %13 = vector.broadcast %12 : vector<1x16xf32> to vector<32x16xf32>
    %14 = arith.addf %11, %13 : vector<32x16xf32>
    %c0_13 = arith.constant 0 : index
    %c0_14 = arith.constant 0 : index
    %15 = vector.load %arg7[%c0_13, %c0_14] : memref<32x16xf32, #tpu.memory_space<vmem>>, vector<32x16xf32>
    tpu.vector_store %arg7[%c0_13, %c0_14], %14 {strides = array<i32>} : memref<32x16xf32, #tpu.memory_space<vmem>>, vector<32x16xf32>,
    return
  }
  func.func @transform_0(%arg0: i32) -> (i32, i32) {
    %c0_i32 = arith.constant 0 : i32
    %c0_i32_0 = arith.constant 0 : i32
    return %arg0, %c0_i32 : i32, i32
  }
  func.func @transform_1(%arg0: i32) -> (i32, i32) {
    %c0_i32 = arith.constant 0 : i32
    %c0_i32_0 = arith.constant 0 : i32
    %c0_i32_1 = arith.constant 0 : i32
    return %c0_i32, %c0_i32_0 : i32, i32
  }
  func.func @transform_2(%arg0: i32) -> (i32, i32) {
    %c0_i32 = arith.constant 0 : i32
    %c0_i32_0 = arith.constant 0 : i32
    %c0_i32_1 = arith.constant 0 : i32
    return %c0_i32, %c0_i32_0 : i32, i32
  }
  func.func @transform_3(%arg0: i32) -> (i32, i32) {
    %c0_i32 = arith.constant 0 : i32
    %c0_i32_0 = arith.constant 0 : i32
    %c0_i32_1 = arith.constant 0 : i32
    return %c0_i32, %c0_i32_0 : i32, i32
  }
  func.func @transform_4(%arg0: i32) -> (i32, i32) {
    %c0_i32 = arith.constant 0 : i32
    %c0_i32_0 = arith.constant 0 : i32
    %c0_i32_1 = arith.constant 0 : i32
    return %c0_i32, %c0_i32_0 : i32, i32
  }
  func.func @transform_5(%arg0: i32) -> (i32, i32) {
    %c0_i32 = arith.constant 0 : i32
    %c0_i32_0 = arith.constant 0 : i32
    %c0_i32_1 = arith.constant 0 : i32
    return %c0_i32, %c0_i32_0 : i32, i32
  }
  func.func @transform_6(%arg0: i32) -> (i32, i32) {
    %c0_i32 = arith.constant 0 : i32
    %c0_i32_0 = arith.constant 0 : i32
    return %arg0, %c0_i32 : i32, i32
  }
}

</mosaic_0001>

<bundles_post_ra>
// kernel: tpu_custom_call.1
= control target key start
LH: loop header
LB: loop body
LE: loop exit
PB: predicated region body
PF: predicated region fallthrough
CT: control target
= control target key end

     0   :  { %vm29_vm0 = vcmask 130048   ;;  %vm645_vm1 = vcmask 261120   ;;  %s2658_s1 = inlined_call_operand.vmem [shape: f32[16,32], index: 1, kind: input, shape index: {}]   ;;  %s2659_s0 = inlined_call_operand.vmem [shape: f32[32,16], index: 0, kind: input, shape index: {}]   ;;  %s2660_s2 = inlined_call_operand.vmem [shape: f32[32,32], index: 2, kind: input, shape index: {}]   ;;  %s2661_s4 = inlined_call_operand.vmem [shape: f32[32,16], index: 4, kind: input, shape index: {}]   ;;  %s2662_s3 = inlined_call_operand.vmem [shape: f32[1,32], index: 3, kind: input, shape index: {}]   ;;  %s2663_s5 = inlined_call_operand.vmem [shape: f32[1,16], index: 5, kind: input, shape index: {}]   ;;  %s2664_s6 = inlined_call_operand.vmem [shape: f32[32,16], index: 6, kind: output, shape index: {}]  }
   0x1   :  { %v27_v0 = vld [vmem:[%s2658_s1] sm:$0xff]  ;;  %v28_v1 = vld [vmem:[%s2658_s1 + $0x8] sm:$0xff]  ;;  %v25_v7 = vld [vmem:[%s2659_s0 + $0x10] sm:$0xff] }
   0x2   :  { %v23_v2 = vld [vmem:[%s2659_s0] sm:$0xff]  ;;  %v43_v3 = vand.u32 4294901760, %v27_v0  ;;  %v46_v4 = vand.u32 4294901760, %v28_v1  ;;  %v24_v6 = vld [vmem:[%s2659_s0 + $0x8] sm:$0xff]  ;;  %v26_v8 = vld [vmem:[%s2659_s0 + $0x18] sm:$0xff]  ;;  %v37_v11 = vsel %vm29_vm0, %v25_v7, 0 }
   0x3   :  { %v31_v5 = vsel %vm29_vm0, %v23_v2, 0  ;;  %v34_v10 = vsel %vm29_vm0, %v24_v6, 0  ;;  %v40_v12 = vsel %vm29_vm0, %v26_v8, 0  ;;  %v129_v15 = vand.u32 4294901760, %v37_v11  ;;  %v634_v44 = vld [vmem:[%s2660_s2] sm:$0xff]  ;;  %v635_v45 = vld [vmem:[%s2660_s2 + $0x8] sm:$0xff] }
   0x4   :  { %v109_v9 = vand.u32 4294901760, %v31_v5  ;;  %v2283_v13 = vpack.c.bf16 %v46_v4, %v43_v3  ;;  %v119_v14 = vand.u32 4294901760, %v34_v10  ;;  %v151_v16 = vsub.f32 %v27_v0, %v43_v3  ;;  %v636_v49 = vld [vmem:[%s2660_s2 + $0x10] sm:$0xff]  ;;  %v637_v50 = vld [vmem:[%s2660_s2 + $0x18] sm:$0xff] }
   0x5   :  { %v158_v18 = vsub.f32 %v28_v1, %v46_v4  ;;  %v139_v19 = vand.u32 4294901760, %v40_v12  ;;  %v130_v21 = vsub.f32 %v37_v11, %v129_v15  ;;  %v659_v46 = vand.u32 4294901760, %v634_v44 }
   0x6   :  { %v110_v17 = vsub.f32 %v31_v5, %v109_v9  ;;  %2296 = vmatprep.subr.bf16.mxu0 %v2283_v13  ;;  %2284 = vmatprep.subr.bf16.mxu1 %v2283_v13  ;;  %v120_v20 = vsub.f32 %v34_v10, %v119_v14  ;;  %v152_v22 = vand.u32 4294901760, %v151_v16  ;;  %v662_v47 = vand.u32 4294901760, %v635_v45 }
   0x7   :  { %2298 = vmatpush3.bf16.msra.mxu0 %v2283_v13  ;;  %2286 = vmatpush3.bf16.msra.mxu1 %v2283_v13  ;;  %v159_v24 = vand.u32 4294901760, %v158_v18  ;;  %v140_v25 = vsub.f32 %v40_v12, %v139_v19  ;;  %v131_v27 = vand.u32 4294901760, %v130_v21  ;;  %v2291_v42 = vpack.c.bf16 %v158_v18, %v151_v16 }
   0x8   :  { %v111_v23 = vand.u32 4294901760, %v110_v17  ;;  %v121_v26 = vand.u32 4294901760, %v120_v20  ;;  %v153_v28 = vsub.f32 %v151_v16, %v152_v22  ;;  %v2550_v48 = vpack.c.bf16 %v662_v47, %v659_v46 }
   0x9   :  { %v160_v30 = vsub.f32 %v158_v18, %v159_v24  ;;  %v141_v31 = vand.u32 4294901760, %v140_v25  ;;  %v2299_v32 = vpack.c.bf16 %v159_v24, %v152_v22  ;;  %v132_v35 = vsub.f32 %v130_v21, %v131_v27 }
   0xa   :  { %2089 = vmatprep.mubr.f32.mxu0 %v111_v23  ;;  %v112_v29 = vsub.f32 %v110_v17, %v111_v23  ;;  %v122_v33 = vsub.f32 %v120_v20, %v121_v26  ;;  %v154_v34 = vand.u32 4294901760, %v153_v28  ;;  %v769_v51 = vsub.f32 %v634_v44, %v659_v46 }
   0xb   :  { %2090 = vmatmul.mubr.f32.vlgmr.msra.gmra.mrb[0].mxu0 %v121_v26  ;;  %v161_v37 = vand.u32 4294901760, %v160_v30  ;;  %2300 = vmatprep.subr.bf16.mxu0 %v2299_v32  ;;  %v142_v38 = vsub.f32 %v140_v25, %v141_v31  ;;  %v133_v40 = vand.u32 4294901760, %v132_v35  ;;  %v776_v52 = vsub.f32 %v635_v45, %v662_v47 }
   0xc   :  { %v113_v36 = vand.u32 4294901760, %v112_v29  ;;  %2092 = vmatprep.mubr.f32.mxu0 %v131_v27  ;;  %v123_v39 = vand.u32 4294901760, %v122_v33  ;;  %2302 = vmatpush3.bf16.msra.mxu0 %v2299_v32  ;;  %v665_v53 = vand.u32 4294901760, %v636_v49  ;;  %v668_v54 = vand.u32 4294901760, %v637_v50 }
   0xd   :  { %v2287_v41 = vpack.c.bf16 %v161_v37, %v154_v34  ;;  %2304 = vmatprep.subr.bf16.mxu0 %v2283_v13  ;;  %v143_v43 = vand.u32 4294901760, %v142_v38  ;;  %v770_v55 = vand.u32 4294901760, %v769_v51  ;;  %v777_v56 = vand.u32 4294901760, %v776_v52 }
   0xe   :  { %2059 = vmatprep.mubr.f32.mxu1 %v113_v36  ;;  %v2560_v57 = vpack.c.bf16 %v668_v54, %v665_v53  ;;  %v783_v60 = vsub.f32 %v636_v49, %v665_v53  ;;  %v790_v61 = vsub.f32 %v637_v50, %v668_v54  ;;  %v2323_v8 = vpack.c.bf16 %v776_v52, %v769_v51  ;;  %v1276_v53 = vld [vmem:[%s2661_s4] sm:$0xff]  ;;  %v1277_v54 = vld [vmem:[%s2661_s4 + $0x8] sm:$0xff] }
   0xf   :  { %2060 = vmatmul.mubr.f32.vlgmr.msra.gmra.mrb[0].mxu1 %v123_v39  ;;  %2093 = vmatmul.mubr.f32.gmra.mrb[2].mxu0 %v141_v31  ;;  %v771_v58 = vsub.f32 %v769_v51, %v770_v55  ;;  %v778_v59 = vsub.f32 %v776_v52, %v777_v56  ;;  %v2564_v10 = vpack.c.bf16 %v777_v56, %v770_v55  ;;  %v1300_v55 = vand.u32 4294901760, %v1276_v53 }
  0x10   :  { %2288 = vmatprep.subr.bf16.mxu1 %v2287_v41  ;;  %2062 = vmatprep.mubr.f32.mxu1 %v133_v40  ;;  %v784_v0 = vand.u32 4294901760, %v783_v60  ;;  %v791_v1 = vand.u32 4294901760, %v790_v61 }
  0x11   :  { %2290 = vmatpush3.bf16.msra.mxu1 %v2287_v41  ;;  %2099 = vmatprep.mubr.f32.mxu0 %v109_v9  ;;  %v772_v62 = vand.u32 4294901760, %v771_v58  ;;  %v779_v63 = vand.u32 4294901760, %v778_v59  ;;  %v1279_v58 = vld [vmem:[%s2661_s4 + $0x18] sm:$0xff]  ;;  %v1410_v59 = vsub.f32 %v1276_v53, %v1300_v55 }
  0x12   :  { %2292 = vmatprep.subr.bf16.mxu1 %v2291_v42  ;;  %v785_v3 = vsub.f32 %v783_v60, %v784_v0  ;;  %v792_v4 = vsub.f32 %v790_v61, %v791_v1  ;;  %v2566_v11 = vpack.c.bf16 %v791_v1, %v784_v0 }
  0x13   :  { %2063 = vmatmul.mubr.f32.gmra.mrb[2].mxu1 %v143_v43  ;;  %2100 = vmatmul.mubr.f32.vlgmr.msra.gmra.mrb[0].mxu0 %v119_v14  ;;  %v2315_v2 = vpack.c.bf16 %v779_v63, %v772_v62  ;;  %v1309_v62 = vand.u32 4294901760, %v1279_v58  ;;  %v1411_v63 = vand.u32 4294901760, %v1410_v59 }
  0x14   :  { %2069 = vmatprep.mubr.f32.mxu1 %v109_v9  ;;  %2102 = vmatprep.mubr.f32.mxu0 %v129_v15  ;;  %v786_v5 = vand.u32 4294901760, %v785_v3  ;;  %v793_v6 = vand.u32 4294901760, %v792_v4 }
  0x15   :  { %2306 = vmatpush3.bf16.msra.mxu0 %v2283_v13 }
  0x16   :  { %v2319_v7 = vpack.c.bf16 %v793_v6, %v786_v5  ;;  %v1431_v5 = vsub.f32 %v1279_v58, %v1309_v62  ;;  %v1922_v58 = vld [vmem:[%s2663_s5] ss:$0 sm:$0xff] }
  0x17   :  { %2070 = vmatmul.mubr.f32.vlgmr.msra.gmra.mrb[0].mxu1 %v119_v14  ;;  %2103 = vmatmul.mubr.f32.gmra.mrb[2].mxu0 %v139_v19 }
  0x18   :  { %2294 = vmatpush3.bf16.msra.mxu1 %v2291_v42  ;;  %2072 = vmatprep.mubr.f32.mxu1 %v129_v15 }
  0x19   :  { %2109 = vmatprep.mubr.f32.mxu0 %v109_v9  ;;  %2308 = vmatprep.subr.bf16.mxu1 %v2550_v48  ;;  %v2327_v9 = vpack.c.bf16 %v790_v61, %v783_v60 }
  0x1b   :  { %2073 = vmatmul.mubr.f32.gmra.mrb[2].mxu1 %v139_v19  ;;  %2110 = vmatmul.mubr.f32.vlgmr.msra.gmra.mrb[0].mxu0 %v119_v14 }
  0x1c   :  { %2079 = vmatprep.mubr.f32.mxu1 %v110_v17  ;;  %2112 = vmatprep.mubr.f32.mxu0 %v129_v15 }
  0x1f   :  { %2080 = vmatmul.mubr.f32.vlgmr.msra.gmra.mrb[0].mxu1 %v120_v20  ;;  %2113 = vmatmul.mubr.f32.gmra.mrb[2].mxu0 %v139_v19 }
  0x20   :  { %2082 = vmatprep.mubr.f32.mxu1 %v130_v21  ;;  %2310 = vmatpush3.bf16.msra.mxu1 %v2550_v48 }
  0x21   :  { %2312 = vmatprep.subr.bf16.mxu1 %v2560_v57 }
  0x23   :  { %2083 = vmatmul.mubr.f32.gmra.mrb[2].mxu1 %v140_v25 }
  0x24   :  { %2314 = vmatpush3.bf16.msra.mxu1 %v2560_v57 }
  0x25   :  { %2316 = vmatprep.subr.bf16.mxu1 %v2315_v2 }
  0xee   :  { %v2111_v12 = vpop.f32.mrb[0].mxu0 }
  0xef   :  { %v608_v13 = vpop.f32.mrb[1].mxu0 }
  0xf2   :  { %v2081_v14 = vpop.f32.mrb[0].mxu1  ;;  %v2114_v15 = vpop.f32.mrb[2].mxu0 }
  0xf3   :  { %v2403_v16 = vadd.f32 %v2111_v12, %v2081_v14  ;;  %v320_v17 = vpop.f32.mrb[1].mxu1  ;;  %v620_v18 = vpop.f32.mrb[3].mxu0 }
  0xf4   :  { %v2404_v19 = vadd.f32 %v608_v13, %v320_v17 }
  0xf5   :  { %2471 = vtanh.f32 %v2403_v16 }
  0xf6   :  { %2473 = vtanh.f32 %v2404_v19  ;;  %v2084_v20 = vpop.f32.mrb[2].mxu1 }
  0xf7   :  { %v2405_v21 = vadd.f32 %v2114_v15, %v2084_v20  ;;  %v334_v22 = vpop.f32.mrb[3].mxu1  ;;  %v1921_v20 = vld [vmem:[%s2662_s3] ss:$0 sm:$0xff] }
  0xf8   :  { %v2406_v23 = vadd.f32 %v620_v18, %v334_v22 }
  0xf9   :  { %2475 = vtanh.f32 %v2405_v21 }
  0xfa   :  { %2477 = vtanh.f32 %v2406_v23 }
  0xff   :  { %v2472_v24 = vpop.eup %2471 }
 0x100   :  { %v2474_v25 = vpop.eup %2473  ;;  %v650_v26 = vsel %vm645_vm1, %v2472_v24, 0 }
 0x101   :  { %v2569_v27 = vand.u32 4294901760, %v650_v26  ;;  %v647_v28 = vsel %vm645_vm1, %v2474_v25, 0 }
 0x102   :  { %v727_v29 = vand.u32 4294901760, %v647_v28 }
 0x103   :  { %v2476_v30 = vpop.eup %2475  ;;  %v738_v31 = vsub.f32 %v650_v26, %v2569_v27 }
 0x104   :  { %v2478_v32 = vpop.eup %2477  ;;  %v728_v33 = vsub.f32 %v647_v28, %v727_v29  ;;  %v656_v34 = vsel %vm645_vm1, %v2476_v30, 0 }
 0x105   :  { %v739_v35 = vand.u32 4294901760, %v738_v31  ;;  %v653_v36 = vsel %vm645_vm1, %v2478_v32, 0  ;;  %v757_v37 = vand.u32 4294901760, %v656_v34 }
 0x106   :  { %v729_v38 = vand.u32 4294901760, %v728_v33  ;;  %v747_v39 = vand.u32 4294901760, %v653_v36 }
 0x107   :  { %v740_v40 = vsub.f32 %v738_v31, %v739_v35  ;;  %v758_v41 = vsub.f32 %v656_v34, %v757_v37 }
 0x108   :  { %v730_v42 = vsub.f32 %v728_v33, %v729_v38  ;;  %v748_v43 = vsub.f32 %v653_v36, %v747_v39 }
 0x109   :  { %v759_v44 = vand.u32 4294901760, %v758_v41  ;;  %v741_v47 = vand.u32 4294901760, %v740_v40 }
 0x10a   :  { %v731_v45 = vand.u32 4294901760, %v730_v42  ;;  %v749_v46 = vand.u32 4294901760, %v748_v43 }
 0x10b   :  { %v760_v49 = vsub.f32 %v758_v41, %v759_v44 }
 0x10c   :  { %2123 = vmatprep.mubr.f32.mxu1 %v731_v45  ;;  %v750_v50 = vsub.f32 %v748_v43, %v749_v46 }
 0x10d   :  { %2124 = vmatmul.mubr.f32.vlgmr.msra.gmra.mrb[4].mxu1 %v741_v47  ;;  %v761_v52 = vand.u32 4294901760, %v760_v49 }
 0x10e   :  { %2318 = vmatpush3.bf16.msra.mxu1 %v2315_v2  ;;  %v751_v51 = vand.u32 4294901760, %v750_v50  ;;  %v1412_v2 = vsub.f32 %v1410_v59, %v1411_v63 }
 0x10f   :  { %2320 = vmatprep.subr.bf16.mxu1 %v2319_v7 }
 0x110   :  { %2126 = vmatprep.mubr.f32.mxu1 %v751_v51  ;;  %v1413_v6 = vand.u32 4294901760, %v1412_v2 }
 0x111   :  { %2127 = vmatmul.mubr.f32.gmra.mrb[6].mxu1 %v761_v52 }
 0x112   :  { %2322 = vmatpush3.bf16.msra.mxu1 %v2319_v7  ;;  %2137 = vmatprep.mubr.f32.mxu1 %v727_v29 }
 0x113   :  { %2324 = vmatprep.subr.bf16.mxu1 %v2323_v8 }
 0x115   :  { %2138 = vmatmul.mubr.f32.vlgmr.msra.gmra.mrb[4].mxu1 %v2569_v27 }
 0x116   :  { %2140 = vmatprep.mubr.f32.mxu1 %v747_v39  ;;  %2326 = vmatpush3.bf16.msra.mxu1 %v2323_v8 }
 0x117   :  { %2328 = vmatprep.subr.bf16.mxu1 %v2327_v9 }
 0x119   :  { %2141 = vmatmul.mubr.f32.gmra.mrb[6].mxu1 %v757_v37 }
 0x11a   :  { %2330 = vmatpush3.bf16.msra.mxu1 %v2327_v9  ;;  %2151 = vmatprep.mubr.f32.mxu1 %v728_v33  ;;  %v1432_v9 = vand.u32 4294901760, %v1431_v5 }
 0x11b   :  { %2332 = vmatprep.subr.bf16.mxu1 %v2550_v48 }
 0x11c   :  { %v1433_v12 = vsub.f32 %v1431_v5, %v1432_v9 }
 0x11d   :  { %2152 = vmatmul.mubr.f32.vlgmr.msra.gmra.mrb[4].mxu1 %v738_v31 }
 0x11e   :  { %2154 = vmatprep.mubr.f32.mxu1 %v748_v43  ;;  %2334 = vmatpush3.bf16.msra.mxu1 %v2550_v48  ;;  %v1434_v14 = vand.u32 4294901760, %v1433_v12 }
 0x11f   :  { %2336 = vmatprep.subr.bf16.mxu1 %v2560_v57 }
 0x121   :  { %2155 = vmatmul.mubr.f32.gmra.mrb[6].mxu1 %v758_v41 }
 0x122   :  { %2338 = vmatpush3.bf16.msra.mxu1 %v2560_v57  ;;  %2165 = vmatprep.mubr.f32.mxu1 %v729_v38 }
 0x123   :  { %2340 = vmatprep.subr.bf16.mxu1 %v2564_v10 }
 0x125   :  { %2166 = vmatmul.mubr.f32.vlgmr.msra.gmra.mrb[4].mxu1 %v739_v35 }
 0x126   :  { %2168 = vmatprep.mubr.f32.mxu1 %v749_v46  ;;  %2342 = vmatpush3.bf16.msra.mxu1 %v2564_v10 }
 0x127   :  { %2344 = vmatprep.subr.bf16.mxu1 %v2566_v11 }
 0x129   :  { %2169 = vmatmul.mubr.f32.gmra.mrb[6].mxu1 %v759_v44 }
 0x12a   :  { %2346 = vmatpush3.bf16.msra.mxu1 %v2566_v11  ;;  %2179 = vmatprep.mubr.f32.mxu1 %v727_v29 }
 0x12b   :  { %2348 = vmatprep.subr.bf16.mxu1 %v2550_v48 }
 0x12d   :  { %2180 = vmatmul.mubr.f32.vlgmr.msra.gmra.mrb[4].mxu1 %v2569_v27 }
 0x12e   :  { %2182 = vmatprep.mubr.f32.mxu1 %v747_v39  ;;  %2350 = vmatpush3.bf16.msra.mxu1 %v2550_v48  ;;  %v1303_v48 = vand.u32 4294901760, %v1277_v54 }
 0x12f   :  { %2352 = vmatprep.subr.bf16.mxu1 %v2560_v57 }
 0x130   :  { %v2596_v56 = vpack.c.bf16 %v1303_v48, %v1300_v55  ;;  %v1417_v60 = vsub.f32 %v1277_v54, %v1303_v48 }
 0x131   :  { %2183 = vmatmul.mubr.f32.gmra.mrb[6].mxu1 %v757_v37 }
 0x132   :  { %2354 = vmatpush3.bf16.msra.mxu1 %v2560_v57  ;;  %2193 = vmatprep.mubr.f32.mxu1 %v727_v29  ;;  %v1278_v57 = vld [vmem:[%s2661_s4 + $0x10] sm:$0xff]  ;;  %v1418_v0 = vand.u32 4294901760, %v1417_v60  ;;  %v2371_v16 = vpack.c.bf16 %v1417_v60, %v1410_v59 }
 0x133   :  { %v1306_v61 = vand.u32 4294901760, %v1278_v57  ;;  %2356 = vmatprep.subr.bf16.mxu0 %v2596_v56 }
 0x134   :  { %2358 = vmatpush3.bf16.msra.mxu0 %v2596_v56  ;;  %v1419_v3 = vsub.f32 %v1417_v60, %v1418_v0  ;;  %v2610_v18 = vpack.c.bf16 %v1418_v0, %v1411_v63 }
 0x135   :  { %2194 = vmatmul.mubr.f32.vlgmr.msra.gmra.mrb[4].mxu1 %v2569_v27  ;;  %v2606_v1 = vpack.c.bf16 %v1309_v62, %v1306_v61  ;;  %v1424_v4 = vsub.f32 %v1278_v57, %v1306_v61 }
 0x136   :  { %2196 = vmatprep.mubr.f32.mxu1 %v747_v39  ;;  %v1420_v7 = vand.u32 4294901760, %v1419_v3 }
 0x137   :  { %2360 = vmatprep.subr.bf16.mxu0 %v2606_v1  ;;  %v1425_v8 = vand.u32 4294901760, %v1424_v4  ;;  %v2375_v17 = vpack.c.bf16 %v1431_v5, %v1424_v4 }
 0x138   :  { %2362 = vmatpush3.bf16.msra.mxu0 %v2606_v1  ;;  %v2363_v10 = vpack.c.bf16 %v1420_v7, %v1413_v6 }
 0x139   :  { %2197 = vmatmul.mubr.f32.gmra.mrb[6].mxu1 %v757_v37  ;;  %v1426_v11 = vsub.f32 %v1424_v4, %v1425_v8  ;;  %v2612_v19 = vpack.c.bf16 %v1432_v9, %v1425_v8 }
 0x13a   :  { %2364 = vmatprep.subr.bf16.mxu0 %v2363_v10 }
 0x13b   :  { %v1427_v13 = vand.u32 4294901760, %v1426_v11 }
 0x13d   :  { %v2367_v15 = vpack.c.bf16 %v1434_v14, %v1427_v13 }
 0x208   :  { %v2195_v21 = vpop.f32.mrb[4].mxu1 }
 0x209   :  { %v2407_v22 = vadd.f32 %v2195_v21, %v1921_v20  ;;  %v1250_v23 = vpop.f32.mrb[5].mxu1 }
 0x20a   :  { %v2408_v24 = vadd.f32 %v1921_v20, %v1250_v23 }
 0x20b   :  { %2479 = vtanh.f32 %v2407_v22 }
 0x20c   :  { %2481 = vtanh.f32 %v2408_v24  ;;  %v2198_v25 = vpop.f32.mrb[6].mxu1 }
 0x20d   :  { %v2409_v26 = vadd.f32 %v2198_v25, %v1921_v20  ;;  %v1262_v27 = vpop.f32.mrb[7].mxu1 }
 0x20e   :  { %v2410_v28 = vadd.f32 %v1921_v20, %v1262_v27 }
 0x20f   :  { %2483 = vtanh.f32 %v2409_v26 }
 0x210   :  { %2485 = vtanh.f32 %v2410_v28 }
 0x215   :  { %v2480_v29 = vpop.eup %2479 }
 0x216   :  { %v2482_v30 = vpop.eup %2481  ;;  %v1291_v31 = vsel %vm645_vm1, %v2480_v29, 0 }
 0x217   :  { %v2618_v32 = vand.u32 4294901760, %v1291_v31  ;;  %v1288_v33 = vsel %vm645_vm1, %v2482_v30, 0 }
 0x218   :  { %v1368_v34 = vand.u32 4294901760, %v1288_v33 }
 0x219   :  { %v2484_v35 = vpop.eup %2483  ;;  %v1379_v36 = vsub.f32 %v1291_v31, %v2618_v32 }
 0x21a   :  { %v2486_v37 = vpop.eup %2485  ;;  %v1369_v38 = vsub.f32 %v1288_v33, %v1368_v34  ;;  %v1297_v39 = vsel %vm645_vm1, %v2484_v35, 0 }
 0x21b   :  { %v1380_v40 = vand.u32 4294901760, %v1379_v36  ;;  %v1294_v41 = vsel %vm645_vm1, %v2486_v37, 0  ;;  %v1398_v42 = vand.u32 4294901760, %v1297_v39 }
 0x21c   :  { %v1370_v43 = vand.u32 4294901760, %v1369_v38  ;;  %v1388_v44 = vand.u32 4294901760, %v1294_v41 }
 0x21d   :  { %v1381_v45 = vsub.f32 %v1379_v36, %v1380_v40  ;;  %v1399_v46 = vsub.f32 %v1297_v39, %v1398_v42 }
 0x21e   :  { %v1371_v47 = vsub.f32 %v1369_v38, %v1370_v43  ;;  %v1389_v49 = vsub.f32 %v1294_v41, %v1388_v44 }
 0x21f   :  { %v1400_v50 = vand.u32 4294901760, %v1399_v46  ;;  %v1382_v53 = vand.u32 4294901760, %v1381_v45 }
 0x220   :  { %v1372_v51 = vand.u32 4294901760, %v1371_v47  ;;  %v1390_v52 = vand.u32 4294901760, %v1389_v49 }
 0x221   :  { %v1401_v54 = vsub.f32 %v1399_v46, %v1400_v50 }
 0x222   :  { %2207 = vmatprep.mubr.f32.mxu0 %v1372_v51  ;;  %v1391_v55 = vsub.f32 %v1389_v49, %v1390_v52 }
 0x223   :  { %2208 = vmatmul.mubr.f32.vlgmr.msra.gmra.mrb[4].mxu0 %v1382_v53  ;;  %v1402_v57 = vand.u32 4294901760, %v1401_v54 }
 0x224   :  { %2366 = vmatpush3.bf16.msra.mxu0 %v2363_v10  ;;  %v1392_v48 = vand.u32 4294901760, %v1391_v55 }
 0x225   :  { %2368 = vmatprep.subr.bf16.mxu0 %v2367_v15 }
 0x226   :  { %2210 = vmatprep.mubr.f32.mxu0 %v1392_v48 }
 0x227   :  { %2211 = vmatmul.mubr.f32.gmra.mrb[6].mxu0 %v1402_v57 }
 0x228   :  { %2370 = vmatpush3.bf16.msra.mxu0 %v2367_v15  ;;  %2221 = vmatprep.mubr.f32.mxu0 %v1368_v34 }
 0x229   :  { %2372 = vmatprep.subr.bf16.mxu0 %v2371_v16 }
 0x22b   :  { %2222 = vmatmul.mubr.f32.vlgmr.msra.gmra.mrb[4].mxu0 %v2618_v32 }
 0x22c   :  { %2224 = vmatprep.mubr.f32.mxu0 %v1388_v44  ;;  %2374 = vmatpush3.bf16.msra.mxu0 %v2371_v16 }
 0x22d   :  { %2376 = vmatprep.subr.bf16.mxu0 %v2375_v17 }
 0x22f   :  { %2225 = vmatmul.mubr.f32.gmra.mrb[6].mxu0 %v1398_v42 }
 0x230   :  { %2378 = vmatpush3.bf16.msra.mxu0 %v2375_v17  ;;  %2235 = vmatprep.mubr.f32.mxu0 %v1369_v38 }
 0x231   :  { %2380 = vmatprep.subr.bf16.mxu0 %v2596_v56 }
 0x233   :  { %2236 = vmatmul.mubr.f32.vlgmr.msra.gmra.mrb[4].mxu0 %v1379_v36 }
 0x234   :  { %2238 = vmatprep.mubr.f32.mxu0 %v1389_v49  ;;  %2382 = vmatpush3.bf16.msra.mxu0 %v2596_v56 }
 0x235   :  { %2384 = vmatprep.subr.bf16.mxu0 %v2606_v1 }
 0x237   :  { %2239 = vmatmul.mubr.f32.gmra.mrb[6].mxu0 %v1399_v46 }
 0x238   :  { %2386 = vmatpush3.bf16.msra.mxu0 %v2606_v1  ;;  %2249 = vmatprep.mubr.f32.mxu0 %v1370_v43 }
 0x239   :  { %2388 = vmatprep.subr.bf16.mxu0 %v2610_v18 }
 0x23b   :  { %2250 = vmatmul.mubr.f32.vlgmr.msra.gmra.mrb[4].mxu0 %v1380_v40 }
 0x23c   :  { %2252 = vmatprep.mubr.f32.mxu0 %v1390_v52  ;;  %2390 = vmatpush3.bf16.msra.mxu0 %v2610_v18 }
 0x23d   :  { %2392 = vmatprep.subr.bf16.mxu0 %v2612_v19 }
 0x23f   :  { %2253 = vmatmul.mubr.f32.gmra.mrb[6].mxu0 %v1400_v50 }
 0x240   :  { %2394 = vmatpush3.bf16.msra.mxu0 %v2612_v19  ;;  %2263 = vmatprep.mubr.f32.mxu0 %v1368_v34 }
 0x241   :  { %2396 = vmatprep.subr.bf16.mxu0 %v2596_v56 }
 0x243   :  { %2264 = vmatmul.mubr.f32.vlgmr.msra.gmra.mrb[4].mxu0 %v2618_v32 }
 0x244   :  { %2266 = vmatprep.mubr.f32.mxu0 %v1388_v44  ;;  %2398 = vmatpush3.bf16.msra.mxu0 %v2596_v56 }
 0x245   :  { %2400 = vmatprep.subr.bf16.mxu0 %v2606_v1 }
 0x247   :  { %2267 = vmatmul.mubr.f32.gmra.mrb[6].mxu0 %v1398_v42 }
 0x248   :  { %2402 = vmatpush3.bf16.msra.mxu0 %v2606_v1  ;;  %2277 = vmatprep.mubr.f32.mxu0 %v1368_v34 }
 0x24b   :  { %2278 = vmatmul.mubr.f32.vlgmr.msra.gmra.mrb[4].mxu0 %v2618_v32 }
 0x24c   :  { %2280 = vmatprep.mubr.f32.mxu0 %v1388_v44 }
 0x24f   :  { %2281 = vmatmul.mubr.f32.gmra.mrb[6].mxu0 %v1398_v42 }
 0x31e   :  { %v2279_v59 = vpop.f32.mrb[4].mxu0 }
 0x31f   :  { %v2411_v60 = vadd.f32 %v2279_v59, %v1922_v58  ;;  %v1891_v61 = vpop.f32.mrb[5].mxu0 }
 0x320   :  { %v2412_v62 = vadd.f32 %v1922_v58, %v1891_v61 }
 0x321   :  { %1914 = vst.msk [vmem:[%s2664_s6 + $0x8] sm:$0xff] %vm29_vm0, %v2411_v60 }
 0x322   :  { %1913 = vst.msk [vmem:[%s2664_s6] sm:$0xff] %vm29_vm0, %v2412_v62  ;;  %v2282_v56 = vpop.f32.mrb[6].mxu0 }
 0x323   :  { %v2413_v63 = vadd.f32 %v2282_v56, %v1922_v58  ;;  %v1903_v0 = vpop.f32.mrb[7].mxu0 }
 0x324   :  { %v2414_v1 = vadd.f32 %v1922_v58, %v1903_v0 }
 0x325   :  { %1916 = vst.msk [vmem:[%s2664_s6 + $0x18] sm:$0xff] %vm29_vm0, %v2413_v63 }
 0x326   :  { %1915 = vst.msk [vmem:[%s2664_s6 + $0x10] sm:$0xff] %vm29_vm0, %v2414_v1 }

</bundles_post_ra>
